<compile_context>
chip_gen: v7x
topology: tpu7x:2x2x1
jax: 0.10.0
libtpu: 0.0.40
codegen_flags: <defaults>
</compile_context>

<pallas_src>
import math

import jax
import jax.numpy as jnp
from jax.experimental import pallas as pl
from jax.experimental.pallas import tpu as pltpu

_LANE = 128


def _round_up(a, b):
    return ((a + b - 1) // b) * b


def _make_gcn_kernel(xs_resident: bool, tk: int):
    """Build the kernel body for one (row-tile i, K-tile k) grid step.

    adj_ref : (TM, TK)        bf16/int8   A_hat[i, k] tile (self loop folded in)
    xs_ref  : (TK, CiP) or (N, CiP) bf16  dinv * x (streamed or VMEM-resident)
    di_ref  : (TM, 1)         f32         dinv for this row tile
    w_ref   : (CiP, CoP)      f32         weight (zero padded)
    b_ref   : (1, CoP)        f32         bias (zero padded)
    out_ref : (TM, CoP)       f32
    acc_ref : (TM, CiP)       f32         VMEM accumulator, resident over K
    """

    def kernel(adj_ref, xs_ref, di_ref, w_ref, b_ref, out_ref, acc_ref):
        k = pl.program_id(1)

        @pl.when(k == 0)
        def _init():
            acc_ref[...] = jnp.zeros_like(acc_ref)

        adj = adj_ref[...]
        if adj.dtype != jnp.bfloat16:
            # int8 (v5e/v6e HBM-saving path): upcast in VMEM, MXU still bf16.
            adj = adj.astype(jnp.bfloat16)

        if xs_resident:
            start = pl.multiple_of(k * tk, tk)
            xs_k = xs_ref[pl.ds(start, tk), :]
        else:
            xs_k = xs_ref[...]

        # bf16 x bf16 on the MXU, f32 accumulation.
        acc_ref[...] += jnp.dot(adj, xs_k, preferred_element_type=jnp.float32)

        @pl.when(k == pl.num_programs(1) - 1)
        def _finalize():
            p = acc_ref[...] * di_ref[...]            # row scale D^-1/2
            out_ref[...] = (
                jnp.dot(p, w_ref[...], preferred_element_type=jnp.float32)
                + b_ref[...]
            )

    return kernel


def gcn_conv(adj, x, weight, bias, *, tm=1024, tk=2048,
             adj_dtype=jnp.bfloat16, max_resident_xs_bytes=8 << 20):
    """adj: [N, N] dense binary adjacency (self loops optional), x: [N, C_in],
    weight: [C_in, C_out], bias: [C_out]  ->  [N, C_out] float32."""
    n = adj.shape[0]
    c_in, c_out = weight.shape

    # ---- host-side prep (one O(N^2) pass; everything else O(N) / O(N*C)) ----
    deg = jnp.sum(adj.astype(jnp.float32), axis=1) + 1.0      # +1: self loop
    dinv = jax.lax.rsqrt(deg).reshape(n, 1)                   # deg >= 1 -> finite
    xs = (x.astype(jnp.float32) * dinv).astype(jnp.bfloat16)  # pre-scaled features

    ci_p = _round_up(c_in, _LANE)
    co_p = _round_up(c_out, _LANE)
    np_ = _round_up(n, 2 * _LANE)      # pad nodes only to 256: bounded overhead

    if np_ == n:                        # skip the extra N^2 pad copy if aligned
        adj_p = adj.astype(adj_dtype)
    else:
        adj_p = jnp.zeros((np_, np_), adj_dtype).at[:n, :n].set(adj.astype(adj_dtype))
    idx = jnp.arange(n)
    adj_p = adj_p.at[idx, idx].add(jnp.ones((n,), adj_dtype))  # fold self loop

    xs_p = jnp.zeros((np_, ci_p), jnp.bfloat16).at[:n, :c_in].set(xs)
    d_p = jnp.zeros((np_, 1), jnp.float32).at[:n, :].set(dinv)
    w_p = jnp.zeros((ci_p, co_p), jnp.float32).at[:c_in, :c_out].set(
        weight.astype(jnp.float32))
    b_p = jnp.zeros((1, co_p), jnp.float32).at[:, :c_out].set(
        bias.reshape(1, c_out).astype(jnp.float32))

    # ---- tile selection: power-of-two multiples of 128 that divide np_ ----
    def _pick(desired):
        t = _LANE
        while t * 2 <= desired and np_ % (t * 2) == 0:
            t *= 2
        return t

    tk_eff = _pick(min(tk, np_))
    tm_eff = _pick(min(tm, max(_LANE, np_ // 2)))   # >=2 row tiles -> both TCs busy

    grid = (np_ // tm_eff, np_ // tk_eff)

    # scaled features: keep the whole [N, CiP] bf16 slab resident in VMEM when
    # it fits; otherwise stream it per K tile (still bf16).
    xs_bytes = np_ * ci_p * 2
    xs_resident = xs_bytes <= max_resident_xs_bytes
    if xs_resident:
        xs_spec = pl.BlockSpec((np_, ci_p), lambda i, k: (0, 0))
    else:
        xs_spec = pl.BlockSpec((tk_eff, ci_p), lambda i, k: (k, 0))

    # ---- VMEM budget -> vmem_limit_bytes (capped at 48 MiB: v7x-safe) ----
    adj_itemsize = jnp.dtype(adj_dtype).itemsize
    est = (2 * tm_eff * tk_eff * adj_itemsize                      # adj double buffer
           + (2 * xs_bytes if xs_resident else 2 * tk_eff * ci_p * 2)
           + 2 * tm_eff * co_p * 4                                 # out double buffer
           + tm_eff * ci_p * 4                                     # f32 accumulator
           + ci_p * co_p * 4 + 4 * tm_eff + 4 * co_p)              # W / dinv / bias
    if adj_dtype != jnp.bfloat16:
        est += tm_eff * tk_eff * 2                                 # in-VMEM bf16 upcast
    vmem_limit = int(min(max(est * 1.4 + (4 << 20), 32 << 20), 48 << 20))

    out_p = pl.pallas_call(
        _make_gcn_kernel(xs_resident, tk_eff),
        out_shape=jax.ShapeDtypeStruct((np_, co_p), jnp.float32),
        grid_spec=pltpu.PrefetchScalarGridSpec(
            num_scalar_prefetch=0,
            grid=grid,
            in_specs=[
                pl.BlockSpec((tm_eff, tk_eff), lambda i, k: (i, k)),  # A_hat tile
                xs_spec,                                              # dinv * x (bf16)
                pl.BlockSpec((tm_eff, 1), lambda i, k: (i, 0)),       # dinv rows
                pl.BlockSpec((ci_p, co_p), lambda i, k: (0, 0)),      # weight
                pl.BlockSpec((1, co_p), lambda i, k: (0, 0)),         # bias
            ],
            out_specs=pl.BlockSpec((tm_eff, co_p), lambda i, k: (i, 0)),
            scratch_shapes=[pltpu.VMEM((tm_eff, ci_p), jnp.float32)],
        ),
        compiler_params=pltpu.CompilerParams(
            dimension_semantics=("parallel", "arbitrary"),
            vmem_limit_bytes=vmem_limit),
    )(adj_p, xs_p, d_p, w_p, b_p)

    return out_p[:n, :c_out]


def gcn_conv_reference(adj, x, weight, bias):
    """Pure-JAX reference matching the PyTorch module (dense adjacency)."""
    n = adj.shape[0]
    a_hat = adj.astype(jnp.float32) + jnp.eye(n, dtype=jnp.float32)
    deg = a_hat.sum(axis=1)
    dinv = jnp.where(deg > 0, deg ** -0.5, 0.0)
    a_norm = a_hat * dinv[:, None] * dinv[None, :]
    return a_norm @ (x @ weight) + bias[None, :]


if __name__ == "__main__":
    # 256 nodes, 8 -> 32 channels (small shapes consistent with the module).
    N, C_IN, C_OUT = 256, 8, 32

    key = jax.random.PRNGKey(0)
    k_adj, k_x, k_w = jax.random.split(key, 3)

    # Random symmetric binary adjacency (what edge_index.to_dense() would give).
    upper = (jax.random.uniform(k_adj, (N, N)) < 0.05).astype(jnp.float32)
    adj = jnp.clip(upper + upper.T, 0.0, 1.0)
    adj = adj * (1.0 - jnp.eye(N, dtype=jnp.float32))   # self loop added in-wrapper

    x = jax.random.normal(k_x, (N, C_IN), dtype=jnp.float32)

    bound = math.sqrt(6.0 / (C_IN + C_OUT))             # xavier_uniform_
    weight = jax.random.uniform(k_w, (C_IN, C_OUT), dtype=jnp.float32,
                                minval=-bound, maxval=bound)
    bias = jnp.zeros((C_OUT,), dtype=jnp.float32)

    ref = gcn_conv_reference(adj, x, weight, bias)

    # 1) default config: resident scaled features, divisor-picked tiles.
    out = jax.block_until_ready(gcn_conv(adj, x, weight, bias))
    # 2) small tiles: resident features + multi-step K accumulation (dyn slice).
    out2 = jax.block_until_ready(gcn_conv(adj, x, weight, bias, tm=128, tk=128))
    # 3) small tiles, streamed features (the large-N fallback path).
    out3 = jax.block_until_ready(
        gcn_conv(adj, x, weight, bias, tm=128, tk=128, max_resident_xs_bytes=0))

    assert out.shape == (N, C_OUT)
    # bf16 aggregation -> bf16-level tolerance vs the all-f32 reference.
    assert jnp.allclose(out, ref, rtol=2e-2, atol=5e-3), "mismatch (default path)"
    assert jnp.allclose(out2, ref, rtol=2e-2, atol=5e-3), "mismatch (resident multi-K)"
    assert jnp.allclose(out3, ref, rtol=2e-2, atol=5e-3), "mismatch (streamed path)"

    print("KERNEL_OK")
</pallas_src>

<mosaic_0001>
module attributes {stable_mosaic.version = 11 : i64} {
  func.func @kernel(%arg0: i32, %arg1: i32, %arg2: memref<128x256xbf16, #tpu.memory_space<vmem>>, %arg3: memref<256x128xbf16, #tpu.memory_space<vmem>>, %arg4: memref<128x1xf32, #tpu.memory_space<vmem>>, %arg5: memref<128x128xf32, #tpu.memory_space<vmem>>, %arg6: memref<1x128xf32, #tpu.memory_space<vmem>>, %arg7: memref<128x128xf32, #tpu.memory_space<vmem>>, %arg8: memref<128x128xf32, #tpu.memory_space<vmem>>) attributes {dimension_semantics = [#tpu.dimension_semantics<parallel>, #tpu.dimension_semantics<arbitrary>], iteration_bounds = array<i64: 2, 1>, scalar_prefetch = 0 : i64, scratch_operands = 1 : i64, tpu.core_type = #tpu.core_type<tc>, window_params = [{transform_indices = @transform_0, window_bounds = array<i64: 128, 256>}, {pipeline_mode = #tpu.pipeline_mode<synchronous>, transform_indices = @transform_1, window_bounds = array<i64: 256, 128>}, {transform_indices = @transform_2, window_bounds = array<i64: 128, 1>}, {pipeline_mode = #tpu.pipeline_mode<synchronous>, transform_indices = @transform_3, window_bounds = array<i64: 128, 128>}, {pipeline_mode = #tpu.pipeline_mode<synchronous>, transform_indices = @transform_4, window_bounds = array<i64: 1, 128>}, {transform_indices = @transform_5, window_bounds = array<i64: 128, 128>}]} {
    %c0_i32 = arith.constant 0 : i32
    %0 = arith.cmpi eq, %arg1, %c0_i32 : i32
    %1 = arith.extui %0 : i1 to i32
    %c0_i32_0 = arith.constant 0 : i32
    %2 = arith.cmpi ne, %1, %c0_i32_0 : i32
    scf.if %2 {
      %cst_9 = arith.constant 0.000000e+00 : f32
      %15 = vector.broadcast %cst_9 : f32 to vector<128x128xf32>
      %c0_10 = arith.constant 0 : index
      %c0_11 = arith.constant 0 : index
      %16 = vector.load %arg8[%c0_10, %c0_11] : memref<128x128xf32, #tpu.memory_space<vmem>>, vector<128x128xf32>
      tpu.vector_store %arg8[%c0_10, %c0_11], %15 {strides = array<i32>} : memref<128x128xf32, #tpu.memory_space<vmem>>, vector<128x128xf32>,
    } else {
    }
    %c0 = arith.constant 0 : index
    %c0_1 = arith.constant 0 : index
    %3 = vector.load %arg2[%c0, %c0_1] : memref<128x256xbf16, #tpu.memory_space<vmem>>, vector<128x256xbf16>
    %c256_i32 = arith.constant 256 : i32
    %4 = arith.muli %arg1, %c256_i32 : i32
    %5 = tpu.assume_multiple %4, 256 : i32
    %6 = arith.index_cast %5 : i32 to index
    %c0_2 = arith.constant 0 : index
    %7 = vector.load %arg3[%6, %c0_2] : memref<256x128xbf16, #tpu.memory_space<vmem>>, vector<256x128xbf16>
    %c0_3 = arith.constant 0 : index
    %c0_4 = arith.constant 0 : index
    %8 = vector.load %arg8[%c0_3, %c0_4] : memref<128x128xf32, #tpu.memory_space<vmem>>, vector<128x128xf32>
    %cst = arith.constant dense<0.000000e+00> : vector<128x128xf32>
    %9 = tpu.matmul %3, %7, %cst {dimension_numbers = #tpu.dot_dimension_numbers<[1], [0], [0], [1], [0, 0, 1, 1], [], []>} : vector<128x256xbf16>, vector<256x128xbf16>, vector<128x128xf32> -> vector<128x128xf32>
    %10 = arith.addf %8, %9 : vector<128x128xf32>
    %c0_5 = arith.constant 0 : index
    %c0_6 = arith.constant 0 : index
    %11 = vector.load %arg8[%c0_5, %c0_6] : memref<128x128xf32, #tpu.memory_space<vmem>>, vector<128x128xf32>
    tpu.vector_store %arg8[%c0_5, %c0_6], %10 {strides = array<i32>} : memref<128x128xf32, #tpu.memory_space<vmem>>, vector<128x128xf32>,
    %c0_i32_7 = arith.constant 0 : i32
    %12 = arith.cmpi eq, %arg1, %c0_i32_7 : i32
    %13 = arith.extui %12 : i1 to i32
    %c0_i32_8 = arith.constant 0 : i32
    %14 = arith.cmpi ne, %13, %c0_i32_8 : i32
    scf.if %14 {
      %c0_9 = arith.constant 0 : index
      %c0_10 = arith.constant 0 : index
      %15 = vector.load %arg8[%c0_9, %c0_10] : memref<128x128xf32, #tpu.memory_space<vmem>>, vector<128x128xf32>
      %c0_11 = arith.constant 0 : index
      %c0_12 = arith.constant 0 : index
      %16 = vector.load %arg4[%c0_11, %c0_12] : memref<128x1xf32, #tpu.memory_space<vmem>>, vector<128x1xf32>
      %17 = vector.broadcast %16 : vector<128x1xf32> to vector<128x128xf32>
      %18 = arith.mulf %15, %17 : vector<128x128xf32>
      %c0_13 = arith.constant 0 : index
      %c0_14 = arith.constant 0 : index
      %19 = vector.load %arg5[%c0_13, %c0_14] : memref<128x128xf32, #tpu.memory_space<vmem>>, vector<128x128xf32>
      %cst_15 = arith.constant dense<0.000000e+00> : vector<128x128xf32>
      %20 = tpu.matmul %18, %19, %cst_15 {dimension_numbers = #tpu.dot_dimension_numbers<[1], [0], [0], [1], [0, 0, 1, 1], [], []>} : vector<128x128xf32>, vector<128x128xf32>, vector<128x128xf32> -> vector<128x128xf32>
      %c0_16 = arith.constant 0 : index
      %c0_17 = arith.constant 0 : index
      %21 = vector.load %arg6[%c0_16, %c0_17] : memref<1x128xf32, #tpu.memory_space<vmem>>, vector<1x128xf32>
      %22 = vector.broadcast %21 : vector<1x128xf32> to vector<128x128xf32>
      %23 = arith.addf %20, %22 : vector<128x128xf32>
      %c0_18 = arith.constant 0 : index
      %c0_19 = arith.constant 0 : index
      %24 = vector.load %arg7[%c0_18, %c0_19] : memref<128x128xf32, #tpu.memory_space<vmem>>, vector<128x128xf32>
      tpu.vector_store %arg7[%c0_18, %c0_19], %23 {strides = array<i32>} : memref<128x128xf32, #tpu.memory_space<vmem>>, vector<128x128xf32>,
    } else {
    }
    return
  }
  func.func @transform_0(%arg0: i32, %arg1: i32) -> (i32, i32) {
    %c0_i32 = arith.constant 0 : i32
    return %arg0, %arg1 : i32, i32
  }
  func.func @transform_1(%arg0: i32, %arg1: i32) -> (i32, i32) {
    %c0_i32 = arith.constant 0 : i32
    %c0_i32_0 = arith.constant 0 : i32
    %c0_i32_1 = arith.constant 0 : i32
    return %c0_i32, %c0_i32_0 : i32, i32
  }
  func.func @transform_2(%arg0: i32, %arg1: i32) -> (i32, i32) {
    %c0_i32 = arith.constant 0 : i32
    %c0_i32_0 = arith.constant 0 : i32
    return %arg0, %c0_i32 : i32, i32
  }
  func.func @transform_3(%arg0: i32, %arg1: i32) -> (i32, i32) {
    %c0_i32 = arith.constant 0 : i32
    %c0_i32_0 = arith.constant 0 : i32
    %c0_i32_1 = arith.constant 0 : i32
    return %c0_i32, %c0_i32_0 : i32, i32
  }
  func.func @transform_4(%arg0: i32, %arg1: i32) -> (i32, i32) {
    %c0_i32 = arith.constant 0 : i32
    %c0_i32_0 = arith.constant 0 : i32
    %c0_i32_1 = arith.constant 0 : i32
    return %c0_i32, %c0_i32_0 : i32, i32
  }
  func.func @transform_5(%arg0: i32, %arg1: i32) -> (i32, i32) {
    %c0_i32 = arith.constant 0 : i32
    %c0_i32_0 = arith.constant 0 : i32
    return %arg0, %c0_i32 : i32, i32
  }
}

</mosaic_0001>

<bundles_post_ra>
// kernel: tpu_custom_call.1
= control target key start
LH: loop header
LB: loop body
LE: loop exit
PB: predicated region body
PF: predicated region fallthrough
CT: control target
= control target key end

     0   :  { %10 = vsyncpa [#allocation4], 0  ;;  %s1947_s0 = inlined_call_operand.vmem [shape: bf16[256,256], index: 0, kind: input, shape index: {}]   ;;  %s1948_s1 = inlined_call_operand.hbm [shape: bf16[256,128], index: 1, kind: input, shape index: {}]   ;;  %s1949_s2 = inlined_call_operand.vmem [shape: f32[256,1], index: 2, kind: input, shape index: {}]   ;;  %s1950_s3 = inlined_call_operand.hbm [shape: f32[128,128], index: 3, kind: input, shape index: {}]   ;;  %s1951_s4 = inlined_call_operand.vmem [shape: f32[1,128], index: 4, kind: input, shape index: {}]   ;;  %s1952_s5 = inlined_call_operand.hbm [shape: f32[256,128], index: 5, kind: output, shape index: {}]  }
   0x1   :  { %11 = vsyncpa [#allocation7], 0 }
   0x2   :  { %12 = vsyncpa [#allocation5], 0 }
   0x3   :  { %14 = vsyncpa [#allocation5 + $0x1], 0  ;;  %s1693_s18 = smov 0   ;;  %s1695_s19 = smov 0  }
   0x4   :  { %s1697_s20 = smov 0   ;;  %s1699_s21 = smov 0  }
   0x5   :  { %s1701_s22 = smov 0   ;;  %s1703_s23 = smov 0  }
   0x6 LB: > { %s1145_s24 = sadd.s32 4294967295, %s1651_s23   ;;  %s1146_s25 = sadd.s32 4294967294, %s1651_s23   ;;  %s1651_s23 = sphi %s1703_s23, %s20_s23   ;;  %s1647_s22 = sphi %s1701_s22, %s1973_s22   ;;  %s1643_s21 = sphi %s1699_s21, %s1972_s21   ;;  %s1639_s20 = sphi %s1697_s20, %s1971_s20   ;;  %s1635_s19 = sphi %s1695_s19, %s1970_s19   ;;  %s1631_s18 = sphi %s1693_s18, %s1969_s18  }
   0x7   : > { %s32_s26 = sadd.s32 1, %s1647_s22  ;;  %s156_s27 = sadd.s32 1, %s1639_s20 }
   0x8   : > { %p34_p0 = scmp.ge.s32.totalorder %s32_s26, 2  ;;  %p166_p1 = scmp.ne.s32.totalorder %s1639_s20, %s1635_s19 }
   0x9   : > { %p167_p2 = scmp.eq.s32.totalorder %s1145_s24, 1  ;;  %p172_p3 = scmp.ne.s32.totalorder %s1635_s19, %s1631_s18 }
   0xa   : > { %s1975_s26 = smov (%p34_p0, %s32_s26), 0  ;;  %p173_p5 = scmp.eq.s32.totalorder %s1146_s25, 1 }
   0xb   : > { %1958 = sst [smem:[#allocation12_spill]] %s1975_s26  ;;  %p1733_p4 = por %p167_p2, %p166_p1 }
   0xc   : > { %s153_s29 = ssub.s32 %s1647_s22, %s1975_s26  ;;  %p1147_p6 = scmp.ge.s32.totalorder %s1651_s23, 1 }
   0xd   : > { %s1959_s28 = scalar_select %p1733_p4, 1, 0 }
   0xe   : > { %p154_p7 = scmp.eq.s32.totalorder %s153_s29, 0  ;;  %p1740_p8 = por %p173_p5, %p172_p3 }
   0xf   : > { %p180_p9 = scmp.lt.s32.totalorder %s1651_s23, 3  ;;  %p1752_p11 = scmp.eq.s32.totalorder %s1145_s24, 0 }
  0x10   : > { %s1960_s30 = scalar_select %p1740_p8, 1, 0 }
  0x11   : > { %s1746_s6 = scalar_select %p154_p7, %s1639_s20, %s156_s27  }
  0x12   : > { %p1748_p10 = pnand %p1147_p6, %p180_p9  ;;  %s1653_s9 = smov [#allocation3]  }
  0x13   : > { %s1962_s8 = scalar_select %p1752_p11, 1, 0 }
  0x14   : > { %s1961_s7 = scalar_select %p1748_p10, 1, 0 }
  0x15   : > { %p1394_p12 = pneg %p1748_p10  ;;  %s192_s10 = sshll.u32 %s1653_s9, 4  ;;  %s193_s10 = int_to_ptr.vmem [resolvable:$true] %s192_s10 }
  0x16   : > { %s1654_s12 = smov [#allocation6]   ;;  %s1509_s16 = scalar_lea.hbm %s1948_s1, 2048 }
  0x17   : > { %p1760_p13 = pnand %p1752_p11, %p1394_p12  ;;  %s205_s13 = sshll.u32 %s1654_s12, 4  ;;  %s1764_s13 = int_to_ptr.vmem [resolvable:$true] %s205_s13 }
  0x18   : > { %p1510_p0 = scmp.ne.s32.totalorder %s1948_s1, %s1509_s16  ;;  %p1516_p5 = scmp.lt.u32.totalorder %s1509_s16, %s1948_s1 }
  0x19   : > { %p1511_p1 = pneg %p1760_p13 }
  0x1b   : > { %p1512_p2 = pnand %p1511_p1, %p1510_p0 }
  0x1d   : > { %p1513_p3 = pneg %p1512_p2 }
  0x1f   : > { %p1518_p6 = pnand %p1516_p5, %p1513_p3 }
  0x21   : > { %1521 = shalt.err (!%p1518_p6)
}
  0x22   : > { %s1522_s29 = scalar_lea.vmem %s193_s10, 2048  ;;  %p1530_p8 = scmp.lt.s32.totalorder %s193_s10, %s193_s10 }
  0x23   : > { %p1523_p7 = scmp.ne.s32.totalorder %s193_s10, %s1522_s29  ;;  %p1531_p4 = scmp.lt.s32.totalorder %s1522_s29, %s1522_s29 }
  0x25   : > { %p1525_p9 = pnand %p1523_p7, %p1511_p1  ;;  %p1532_p11 = por %p1531_p4, %p1530_p8 }
  0x27   : > { %p1526_p12 = pneg %p1525_p9 }
  0x29   : > { %p1533_p10 = pnand %p1532_p11, %p1526_p12 }
  0x2b   : > { %1536 = shalt.err (!%p1533_p10)
}
  0x2c   : > { %s1655_s9 = smov 64   ;;  %s1656_s12 = smov 4  }
  0x2d   : > { %1397 = dma.hbm_to_vmem [thread:$0]  (!%p1760_p13), %s1948_s1, 2048, %s193_s10, [#allocation4], %s1655_s9, %s1655_s9, %s1656_s12  }
  0x2e   : > { %s1537_s24 = scalar_lea.hbm %s1950_s3, 2048 }
  0x2f   : > { %p1538_p0 = scmp.ne.s32.totalorder %s1950_s3, %s1537_s24  ;;  %p1544_p10 = scmp.lt.u32.totalorder %s1537_s24, %s1950_s3 }
  0x31   : > { %p1540_p4 = pnand %p1538_p0, %p1511_p1 }
  0x33   : > { %p1541_p8 = pneg %p1540_p4 }
  0x35   : > { %p1546_p11 = pnand %p1544_p10, %p1541_p8 }
  0x37   : > { %1549 = shalt.err (!%p1546_p11)
}
  0x38   : > { %s1550_s10 = scalar_lea.vmem %s1764_s13, 2048  ;;  %p1558_p6 = scmp.lt.s32.totalorder %s1764_s13, %s1764_s13 }
  0x39   : > { %p1551_p2 = scmp.ne.s32.totalorder %s1764_s13, %s1550_s10  ;;  %p1559_p7 = scmp.lt.s32.totalorder %s1550_s10, %s1550_s10 }
  0x3b   : > { %p1553_p3 = pnand %p1551_p2, %p1511_p1  ;;  %p1560_p9 = por %p1559_p7, %p1558_p6 }
  0x3d   : > { %p1554_p5 = pneg %p1553_p3 }
  0x3f   : > { %p1561_p12 = pnand %p1560_p9, %p1554_p5 }
  0x41   : > { %1564 = shalt.err (!%p1561_p12)
}
  0x42   : > { %s1657_s26 = smov 128   ;;  %s1658_s9 = smov 8  }
  0x43   : > { %1400 = dma.hbm_to_vmem [thread:$0]  (!%p1760_p13), %s1950_s3, 2048, %s1764_s13, [#allocation7], %s1657_s26, %s1657_s26, %s1658_s9  }
  0x44   : > { %p1964_p0 = scmp.ne.s32.totalorder %s1961_s7, 0 }
  0x45   : > { %p1965_p1 = scmp.ne.s32.totalorder (!%p1964_p0), %s1962_s8, 0 }
  0x46   : > { %248 = sbr.rel (%p1964_p0) target bundleno = 619 (0x26b), region = 40 }
  0x4d   : > { %1618 = dma.done.wait (%p1965_p1), [#allocation4], 2048  }
  0x4e   : > { %1620 = vsyncadd (%p1965_p1), [#allocation4], 4294965248 }
  0x4f   : > { %1622 = dma.done.wait (%p1965_p1), [#allocation7], 2048  }
  0x50   : > { %1624 = vsyncadd (%p1965_p1), [#allocation7], 4294965248  ;;  %v1659_v0 = vmov 0   ;;  %v1469_v1 = vld [vmem:[#allocation3 + $0x40] sm:$0xff]   ;;  %s1155_s11 = sshll.u32 %s1643_s21, 4  ;;  %v1471_v3 = vld [vmem:[#allocation3 + $0x48] sm:$0xff]  }
  0x51   : > { %1467 = vset.pattern.permute.xlu0 %v1659_v0  ;;  %1468 = vset.pattern.permute.xlu1 %v1659_v0  ;;  %v1470_v2 = vld [vmem:[#allocation3] sm:$0xff]   ;;  %v1472_v4 = vld [vmem:[#allocation3 + $0x8] sm:$0xff]   ;;  %p292_p13 = scmp.lt.s32.totalorder %s1155_s11, 31  ;;  %v1473_v5 = vld [vmem:[#allocation3 + $0x50] sm:$0xff]   ;;  %s287_s25 = sand.u32 1, %s1635_s19  }
  0x52   : > { %1200 = vmatprep.subr.bf16.mxu0 %v1469_v1  ;;  %v1474_v6 = vld [vmem:[#allocation3 + $0x10] sm:$0xff]   ;;  %v1475_v7 = vld [vmem:[#allocation3 + $0x58] sm:$0xff]   ;;  %v1477_v9 = vld [vmem:[#allocation3 + $0x60] sm:$0xff]   ;;  %s1154_s27 = sshll.u32 %s287_s25, 7  ;;  %s1199_s9 = sshll.u32 %s1643_s21, 11 }
  0x53   : > { %1201 = vmatpush3.bf16.msra.mxu0 %v1470_v2  ;;  %s1977_s11 = smov (!%p292_p13, %s1155_s11), 31  ;;  %v1476_v8 = vld [vmem:[#allocation3 + $0x18] sm:$0xff]   ;;  %v1478_v10 = vld [vmem:[#allocation3 + $0x20] sm:$0xff]   ;;  %v1479_v11 = vld [vmem:[#allocation3 + $0x68] sm:$0xff]   ;;  %s1872_s26 = scalar_lea.vmem [#allocation8], %s1154_s27 }
  0x54   : > { %1202 = vmatprep.subr.bf16.mxu0 %v1471_v3  ;;  %s1198_s7 = sshll.u32 %s1977_s11, 3  ;;  %v1480_v13 = vld [vmem:[#allocation3 + $0x28] sm:$0xff]   ;;  %v1481_v14 = vld [vmem:[#allocation3 + $0x70] sm:$0xff]   ;;  %v1483_v16 = vld [vmem:[#allocation3 + $0x78] sm:$0xff]   ;;  %s1033_s12 = sshll.u32 %s1872_s26, 4  ;;  %s1895_s12 = int_to_ptr.vmem [resolvable:$true] %s1033_s12 }
  0x55   : > { %s1827_s15 = scalar_lea.vmem %s1947_s0, %s1198_s7  ;;  %v1482_v15 = vld [vmem:[#allocation3 + $0x30] sm:$0xff]   ;;  %s1833_s24 = scalar_lea.vmem %s1949_s2, %s1198_s7  ;;  %v1484_v18 = vld [vmem:[#allocation3 + $0x38] sm:$0xff]   ;;  %v835_v25 = vld [vmem:[#allocation6] sm:$0xff] }
  0x56   : > { %v1487_v12 = vld [vmem:[%s1827_s15 + $0x4] ss:$8 sps:$4 sm:$0xff]   ;;  %v725_v19 = vld [vmem:[%s1833_s24 + $0x10] sm:$0xff]  ;;  %v726_v21 = vld [vmem:[%s1833_s24 + $0x18] sm:$0xff]  ;;  %s1893_s7 = scalar_lea.hbm %s1952_s5, %s1199_s9  ;;  %s1901_s8 = scalar_lea.sflag [#allocation5], %s287_s25 }
  0x57   : > { %1203 = vmatpush3.bf16.msra.mxu0 %v1472_v4  ;;  %607 = vmatprep.mubr.bf16.mxu0 %v1487_v12  ;;  %v723_v17 = vld [vmem:[%s1833_s24] sm:$0xff]  ;;  %v724_v20 = vld [vmem:[%s1833_s24 + $0x8] sm:$0xff]  ;;  %v1488_v23 = vld [vmem:[%s1827_s15 + $0x14] ss:$8 sps:$4 sm:$0xff]   ;;  %s1565_s21 = scalar_lea.vmem %s1895_s12, 2048  ;;  %p1966_p8 = scmp.ne.s32.totalorder %s1959_s28, 0 }
  0x58   : > { %1204 = vmatprep.subr.bf16.mxu0 %v1473_v5  ;;  %741 = vperm.xlu0 %1467, %v723_v17   ;;  %v1485_v22 = vld [vmem:[%s1827_s15] ss:$8 sps:$4 sm:$0xff]   ;;  %v837_v27 = vld [vmem:[#allocation6 + $0x10] sm:$0xff]  ;;  %v838_v30 = vld [vmem:[#allocation6 + $0x18] sm:$0xff]  ;;  %p1566_p4 = scmp.ne.s32.totalorder %s1895_s12, %s1565_s21  ;;  %s1660_s13 = smov [#allocation8]  }
  0x59   : > { %751 = vperm.xlu1 %1468, %v725_v19   ;;  %v727_v24 = vld [vmem:[%s1833_s24 + $0x20] sm:$0xff]  ;;  %v836_v26 = vld [vmem:[#allocation6 + $0x8] sm:$0xff]  ;;  %v1356_v31 = vpack.c.bf16 %v838_v30, %v837_v27  ;;  %v729_v34 = vld [vmem:[%s1833_s24 + $0x30] sm:$0xff] }
  0x5a   : > { %v728_v28 = vld [vmem:[%s1833_s24 + $0x28] sm:$0xff]  ;;  %v1352_v29 = vpack.c.bf16 %v836_v26, %v835_v25  ;;  %v839_v32 = vld [vmem:[#allocation6 + $0x20] sm:$0xff]  ;;  %v730_v35 = vld [vmem:[%s1833_s24 + $0x38] sm:$0xff]  ;;  %p1567_p10 = pnand %p1566_p4, %p1966_p8 }
  0x5b   : > { %1205 = vmatpush3.bf16.msra.mxu0 %v1474_v6  ;;  %v840_v33 = vld [vmem:[#allocation6 + $0x28] sm:$0xff]  ;;  %v1490_v36 = vld [vmem:[%s1827_s15 + $0x10] ss:$8 sps:$4 sm:$0xff]   ;;  %v731_v41 = vld [vmem:[%s1833_s24 + $0x40] sm:$0xff] }
  0x5c   : > { %1206 = vmatprep.subr.bf16.mxu0 %v1475_v7  ;;  %746 = vperm.xlu0 %1467, %v724_v20   ;;  %v1360_v37 = vpack.c.bf16 %v840_v33, %v839_v32  ;;  %v1491_v38 = vld [vmem:[%s1827_s15 + $0x24] ss:$8 sps:$4 sm:$0xff]   ;;  %v841_v39 = vld [vmem:[#allocation6 + $0x30] sm:$0xff]  ;;  %v842_v40 = vld [vmem:[#allocation6 + $0x38] sm:$0xff]  ;;  %p1568_p11 = pneg %p1567_p10 }
  0x5d   : > { %756 = vperm.xlu1 %1468, %v726_v21   ;;  %1353 = vmatprep.subr.bf16.mxu1 %v1352_v29  ;;  %v732_v42 = vld [vmem:[%s1833_s24 + $0x48] sm:$0xff]  ;;  %v1364_v43 = vpack.c.bf16 %v842_v40, %v841_v39  ;;  %v843_v44 = vld [vmem:[#allocation6 + $0x40] sm:$0xff]  ;;  %v733_v46 = vld [vmem:[%s1833_s24 + $0x50] sm:$0xff] }
  0x5e   : > { %1355 = vmatpush3.bf16.msra.mxu1 %v1352_v29  ;;  %v844_v45 = vld [vmem:[#allocation6 + $0x48] sm:$0xff]  ;;  %v734_v47 = vld [vmem:[%s1833_s24 + $0x58] sm:$0xff]  ;;  %v845_v51 = vld [vmem:[#allocation6 + $0x50] sm:$0xff] }
  0x5f   : > { %1207 = vmatpush3.bf16.msra.mxu0 %v1476_v8  ;;  %1357 = vmatprep.subr.bf16.mxu1 %v1356_v31  ;;  %v1493_v48 = vld [vmem:[%s1827_s15 + $0x20] ss:$8 sps:$4 sm:$0xff]   ;;  %v1368_v49 = vpack.c.bf16 %v844_v45, %v843_v44  ;;  %v1494_v50 = vld [vmem:[%s1827_s15 + $0x34] ss:$8 sps:$4 sm:$0xff]   ;;  %v1496_v58 = vld [vmem:[%s1827_s15 + $0x30] ss:$8 sps:$4 sm:$0xff]  }
  0x60   : > { %1208 = vmatprep.subr.bf16.mxu0 %v1477_v9  ;;  %761 = vperm.xlu0 %1467, %v727_v24   ;;  %v846_v52 = vld [vmem:[#allocation6 + $0x58] sm:$0xff]  ;;  %v735_v53 = vld [vmem:[%s1833_s24 + $0x60] sm:$0xff]  ;;  %v736_v54 = vld [vmem:[%s1833_s24 + $0x68] sm:$0xff] }
  0x61   : > { %766 = vperm.xlu1 %1468, %v728_v28   ;;  %v1372_v55 = vpack.c.bf16 %v846_v52, %v845_v51  ;;  %v737_v56 = vld [vmem:[%s1833_s24 + $0x70] sm:$0xff]  ;;  %v738_v57 = vld [vmem:[%s1833_s24 + $0x78] sm:$0xff]  ;;  %v1497_v59 = vld [vmem:[%s1827_s15 + $0x44] ss:$8 sps:$4 sm:$0xff]  }
  0x62   : > { %1359 = vmatpush3.bf16.msra.mxu1 %v1356_v31  ;;  %v1499_v60 = vld [vmem:[%s1827_s15 + $0x40] ss:$8 sps:$4 sm:$0xff]   ;;  %v1500_v61 = vld [vmem:[%s1827_s15 + $0x54] ss:$8 sps:$4 sm:$0xff]   ;;  %v1502_v62 = vld [vmem:[%s1827_s15 + $0x50] ss:$8 sps:$4 sm:$0xff]  }
  0x63   : > { %1209 = vmatpush3.bf16.msra.mxu0 %v1478_v10  ;;  %1361 = vmatprep.subr.bf16.mxu1 %v1360_v37  ;;  %v1503_v63 = vld [vmem:[%s1827_s15 + $0x64] ss:$8 sps:$4 sm:$0xff]   ;;  %v1505_v0 = vld [vmem:[%s1827_s15 + $0x60] ss:$8 sps:$4 sm:$0xff]   ;;  %v1506_v1 = vld [vmem:[%s1827_s15 + $0x74] ss:$8 sps:$4 sm:$0xff]  }
  0x64   : > { %1210 = vmatprep.subr.bf16.mxu0 %v1479_v11  ;;  %771 = vperm.xlu0 %1467, %v729_v34   ;;  %v1508_v2 = vld [vmem:[%s1827_s15 + $0x70] ss:$8 sps:$4 sm:$0xff]   ;;  %v847_v3 = vld [vmem:[#allocation6 + $0x60] sm:$0xff]  ;;  %v848_v4 = vld [vmem:[#allocation6 + $0x68] sm:$0xff]  ;;  %s1569_s15 = sshll.u32 %s1660_s13, 4  ;;  %s1570_s15 = int_to_ptr.vmem [resolvable:$false] %s1569_s15 }
  0x65   : > { %776 = vperm.xlu1 %1468, %v730_v35   ;;  %v1376_v5 = vpack.c.bf16 %v848_v4, %v847_v3  ;;  %v849_v6 = vld [vmem:[#allocation6 + $0x70] sm:$0xff]  ;;  %v850_v7 = vld [vmem:[#allocation6 + $0x78] sm:$0xff]  ;;  %s1571_s16 = scalar_lea.vmem %s1570_s15, 4096  ;;  %p1572_p2 = scmp.lt.s32.totalorder %s1895_s12, %s1570_s15 }
  0x66   : > { %1363 = vmatpush3.bf16.msra.mxu1 %v1360_v37  ;;  %v1380_v8 = vpack.c.bf16 %v850_v7, %v849_v6  ;;  %p1573_p3 = scmp.lt.s32.totalorder %s1571_s16, %s1565_s21 }
  0x67   : > { %1211 = vmatpush3.bf16.msra.mxu0 %v1480_v13  ;;  %1365 = vmatprep.subr.bf16.mxu1 %v1364_v43 }
  0x68   : > { %1212 = vmatprep.subr.bf16.mxu0 %v1481_v14  ;;  %781 = vperm.xlu0 %1467, %v731_v41   ;;  %p1574_p5 = por %p1573_p3, %p1572_p2 }
  0x69   : > { %786 = vperm.xlu1 %1468, %v732_v42  }
  0x6a   : > { %1367 = vmatpush3.bf16.msra.mxu1 %v1364_v43  ;;  %p1575_p6 = pnand %p1574_p5, %p1568_p11 }
  0x6b   : > { %1213 = vmatpush3.bf16.msra.mxu0 %v1482_v15  ;;  %1369 = vmatprep.subr.bf16.mxu1 %v1368_v49 }
  0x6c   : > { %1214 = vmatprep.subr.bf16.mxu0 %v1483_v16  ;;  %791 = vperm.xlu0 %1467, %v733_v46  }
  0x6d   : > { %796 = vperm.xlu1 %1468, %v734_v47  }
  0x6e   : > { %1371 = vmatpush3.bf16.msra.mxu1 %v1368_v49 }
  0x6f   : > { %1215 = vmatpush3.bf16.msra.mxu0 %v1484_v18  ;;  %1373 = vmatprep.subr.bf16.mxu1 %v1372_v55 }
  0x70   : > { %801 = vperm.xlu0 %1467, %v735_v53  }
  0x71   : > { %806 = vperm.xlu1 %1468, %v736_v54  }
  0x72   : > { %608 = vmatmul.mubr.bf16.vlgmr.msra.gmra.mrb[0].mxu0 %v1485_v22  ;;  %1375 = vmatpush3.bf16.msra.mxu1 %v1372_v55 }
  0x73   : > { %615 = vmatprep.mubr.bf16.mxu0 %v1488_v23  ;;  %1377 = vmatprep.subr.bf16.mxu1 %v1376_v5 }
  0x74   : > { %811 = vperm.xlu0 %1467, %v737_v56  }
  0x75   : > { %816 = vperm.xlu1 %1468, %v738_v57  }
  0x76   : > { %1379 = vmatpush3.bf16.msra.mxu1 %v1376_v5 }
  0x77   : > { %1381 = vmatprep.subr.bf16.mxu1 %v1380_v8 }
  0x7a   : > { %616 = vmatmul.mubr.bf16.gmra.mrb[4].mxu0 %v1490_v36  ;;  %1383 = vmatpush3.bf16.msra.mxu1 %v1380_v8 }
  0x7b   : > { %623 = vmatprep.mubr.bf16.mxu0 %v1491_v38 }
  0x82   : > { %624 = vmatmul.mubr.bf16.gmra.mrb[8].mxu0 %v1493_v48 }
  0x83   : > { %631 = vmatprep.mubr.bf16.mxu0 %v1494_v50 }
  0x8a   : > { %632 = vmatmul.mubr.bf16.gmra.mrb[12].mxu0 %v1496_v58 }
  0x8b   : > { %639 = vmatprep.mubr.bf16.mxu0 %v1497_v59 }
  0x92   : > { %640 = vmatmul.mubr.bf16.gmra.mrb[16].mxu0 %v1499_v60 }
  0x93   : > { %647 = vmatprep.mubr.bf16.mxu0 %v1500_v61 }
  0x9a   : > { %648 = vmatmul.mubr.bf16.gmra.mrb[20].mxu0 %v1502_v62 }
  0x9b   : > { %655 = vmatprep.mubr.bf16.mxu0 %v1503_v63 }
  0xa2   : > { %656 = vmatmul.mubr.bf16.gmra.mrb[24].mxu0 %v1505_v0 }
  0xa3   : > { %663 = vmatprep.mubr.bf16.mxu0 %v1506_v1 }
  0xaa   : > { %664 = vmatmul.mubr.bf16.gmra.mrb[28].mxu0 %v1508_v2 }
  0xd7   : > { %v742_v9 = vpop.permute.xlu0 %741 }
  0xd8   : > { %v752_v19 = vpop.permute.xlu1 %751 }
  0xdb   : > { %v747_v15 = vpop.permute.xlu0 %746 }
  0xdc   : > { %v757_v27 = vpop.permute.xlu1 %756 }
  0xdf   : > { %v762_v33 = vpop.permute.xlu0 %761 }
  0xe0   : > { %v767_v37 = vpop.permute.xlu1 %766 }
  0xe3   : > { %v772_v43 = vpop.permute.xlu0 %771 }
  0xe4   : > { %v777_v47 = vpop.permute.xlu1 %776 }
  0xe7   : > { %v782_v53 = vpop.permute.xlu0 %781 }
  0xe8   : > { %v787_v57 = vpop.permute.xlu1 %786 }
  0xeb   : > { %v792_v63 = vpop.permute.xlu0 %791 }
  0xec   : > { %v797_v3 = vpop.permute.xlu1 %796 }
 0x145   : > { %v1216_v10 = vpop.f32.mrb[0].mxu0 }
 0x146   : > { %v1217_v11 = vpop.f32.mrb[1].mxu0 }
 0x147   : > { %v1218_v12 = vadd.f32 %v1217_v11, %v1216_v10  ;;  %v1219_v13 = vpop.f32.mrb[2].mxu0 }
 0x148   : > { %v1220_v14 = vpop.f32.mrb[3].mxu0 }
 0x149   : > { %v1221_v16 = vadd.f32 %v1220_v14, %v1219_v13  ;;  %v819_v17 = vmul.f32 %v1218_v12, %v742_v9  ;;  %v802_v9 = vpop.permute.xlu0 %801  ;;  %v807_v13 = vpop.permute.xlu1 %806 }
 0x14b   : > { %v820_v18 = vmul.f32 %v1221_v16, %v747_v15  ;;  %1328 = vmatprep.mubr.f32.mxu1 %v819_v17 }
 0x14d   : > { %v1222_v20 = vpop.f32.mrb[4].mxu0  ;;  %1329 = vmatmul.mubr.f32.vlgmr.msra.gmra.mrb[0].mxu1 %v820_v18 }
 0x14e   : > { %v1223_v21 = vpop.f32.mrb[5].mxu0 }
 0x14f   : > { %v1224_v22 = vadd.f32 %v1223_v21, %v1222_v20  ;;  %v1225_v23 = vpop.f32.mrb[6].mxu0 }
 0x150   : > { %v1226_v24 = vpop.f32.mrb[7].mxu0 }
 0x151   : > { %v821_v25 = vmul.f32 %v1224_v22, %v752_v19  ;;  %v1227_v26 = vadd.f32 %v1226_v24, %v1225_v23  ;;  %v812_v19 = vpop.permute.xlu0 %811  ;;  %v817_v23 = vpop.permute.xlu1 %816 }
 0x153   : > { %v822_v28 = vmul.f32 %v1227_v26, %v757_v27  ;;  %1331 = vmatprep.mubr.f32.mxu1 %v821_v25  ;;  %v1192_v25 = vld [vmem:[%s1951_s4] ss:$0 sm:$0xff] }
 0x155   : > { %v1228_v29 = vpop.f32.mrb[8].mxu0  ;;  %1332 = vmatmul.mubr.f32.gmra.mrb[2].mxu1 %v822_v28 }
 0x156   : > { %v1229_v30 = vpop.f32.mrb[9].mxu0 }
 0x157   : > { %v1230_v31 = vadd.f32 %v1229_v30, %v1228_v29  ;;  %v1231_v32 = vpop.f32.mrb[10].mxu0 }
 0x158   : > { %v1232_v34 = vpop.f32.mrb[11].mxu0 }
 0x159   : > { %v823_v35 = vmul.f32 %v1230_v31, %v762_v33  ;;  %v1233_v36 = vadd.f32 %v1232_v34, %v1231_v32 }
 0x15b   : > { %v824_v38 = vmul.f32 %v1233_v36, %v767_v37  ;;  %1334 = vmatprep.mubr.f32.mxu1 %v823_v35 }
 0x15d   : > { %v1234_v39 = vpop.f32.mrb[12].mxu0  ;;  %1335 = vmatmul.mubr.f32.gmra.mrb[4].mxu1 %v824_v38 }
 0x15e   : > { %v1235_v40 = vpop.f32.mrb[13].mxu0 }
 0x15f   : > { %v1236_v41 = vadd.f32 %v1235_v40, %v1234_v39  ;;  %v1237_v42 = vpop.f32.mrb[14].mxu0 }
 0x160   : > { %v1238_v44 = vpop.f32.mrb[15].mxu0 }
 0x161   : > { %v825_v45 = vmul.f32 %v1236_v41, %v772_v43  ;;  %v1239_v46 = vadd.f32 %v1238_v44, %v1237_v42 }
 0x163   : > { %v826_v48 = vmul.f32 %v1239_v46, %v777_v47  ;;  %1337 = vmatprep.mubr.f32.mxu1 %v825_v45 }
 0x165   : > { %v1240_v49 = vpop.f32.mrb[16].mxu0  ;;  %1338 = vmatmul.mubr.f32.gmra.mrb[6].mxu1 %v826_v48 }
 0x166   : > { %v1241_v50 = vpop.f32.mrb[17].mxu0 }
 0x167   : > { %v1242_v51 = vadd.f32 %v1241_v50, %v1240_v49  ;;  %v1243_v52 = vpop.f32.mrb[18].mxu0 }
 0x168   : > { %v1244_v54 = vpop.f32.mrb[19].mxu0 }
 0x169   : > { %v827_v55 = vmul.f32 %v1242_v51, %v782_v53  ;;  %v1245_v56 = vadd.f32 %v1244_v54, %v1243_v52 }
 0x16b   : > { %v828_v58 = vmul.f32 %v1245_v56, %v787_v57  ;;  %1340 = vmatprep.mubr.f32.mxu1 %v827_v55 }
 0x16d   : > { %v1246_v59 = vpop.f32.mrb[20].mxu0  ;;  %1341 = vmatmul.mubr.f32.gmra.mrb[8].mxu1 %v828_v58 }
 0x16e   : > { %v1247_v60 = vpop.f32.mrb[21].mxu0 }
 0x16f   : > { %v1248_v61 = vadd.f32 %v1247_v60, %v1246_v59  ;;  %v1249_v62 = vpop.f32.mrb[22].mxu0 }
 0x170   : > { %v1250_v0 = vpop.f32.mrb[23].mxu0 }
 0x171   : > { %v829_v1 = vmul.f32 %v1248_v61, %v792_v63  ;;  %v1251_v2 = vadd.f32 %v1250_v0, %v1249_v62 }
 0x173   : > { %v830_v4 = vmul.f32 %v1251_v2, %v797_v3  ;;  %1343 = vmatprep.mubr.f32.mxu1 %v829_v1 }
 0x175   : > { %v1252_v5 = vpop.f32.mrb[24].mxu0  ;;  %1344 = vmatmul.mubr.f32.gmra.mrb[10].mxu1 %v830_v4 }
 0x176   : > { %v1253_v6 = vpop.f32.mrb[25].mxu0 }
 0x177   : > { %v1254_v7 = vadd.f32 %v1253_v6, %v1252_v5  ;;  %v1255_v8 = vpop.f32.mrb[26].mxu0 }
 0x178   : > { %v1256_v10 = vpop.f32.mrb[27].mxu0 }
 0x179   : > { %v831_v11 = vmul.f32 %v1254_v7, %v802_v9  ;;  %v1257_v12 = vadd.f32 %v1256_v10, %v1255_v8 }
 0x17b   : > { %v832_v14 = vmul.f32 %v1257_v12, %v807_v13  ;;  %1346 = vmatprep.mubr.f32.mxu1 %v831_v11 }
 0x17d   : > { %v1258_v15 = vpop.f32.mrb[28].mxu0  ;;  %1347 = vmatmul.mubr.f32.gmra.mrb[12].mxu1 %v832_v14 }
 0x17e   : > { %v1259_v16 = vpop.f32.mrb[29].mxu0 }
 0x17f   : > { %v1260_v17 = vadd.f32 %v1259_v16, %v1258_v15  ;;  %v1261_v18 = vpop.f32.mrb[30].mxu0 }
 0x180   : > { %v1262_v20 = vpop.f32.mrb[31].mxu0 }
 0x181   : > { %v833_v21 = vmul.f32 %v1260_v17, %v812_v19  ;;  %v1263_v22 = vadd.f32 %v1262_v20, %v1261_v18 }
 0x183   : > { %v834_v24 = vmul.f32 %v1263_v22, %v817_v23  ;;  %1349 = vmatprep.mubr.f32.mxu1 %v833_v21 }
 0x185   : > { %1350 = vmatmul.mubr.f32.gmra.mrb[14].mxu1 %v834_v24 }
 0x220   : > { %v1330_v26 = vpop.f32.mrb[0].mxu1 }
 0x221   : > { %v930_v27 = vadd.f32 %v1330_v26, %v1192_v25  ;;  %v924_v28 = vpop.f32.mrb[1].mxu1 }
 0x222   : > { %v925_v29 = vadd.f32 %v1192_v25, %v924_v28 }
 0x223   : > { %1004 = vst [vmem:[%s1872_s26 + $0x8] sm:$0xff] %v930_v27 }
 0x224   : > { %1003 = vst [vmem:[%s1872_s26] sm:$0xff] %v925_v29 }
 0x228   : > { %v1333_v30 = vpop.f32.mrb[2].mxu1 }
 0x229   : > { %v940_v31 = vadd.f32 %v1333_v30, %v1192_v25  ;;  %v934_v32 = vpop.f32.mrb[3].mxu1 }
 0x22a   : > { %v935_v33 = vadd.f32 %v1192_v25, %v934_v32 }
 0x22b   : > { %1006 = vst [vmem:[%s1872_s26 + $0x18] sm:$0xff] %v940_v31 }
 0x22c   : > { %1005 = vst [vmem:[%s1872_s26 + $0x10] sm:$0xff] %v935_v33 }
 0x230   : > { %v1336_v34 = vpop.f32.mrb[4].mxu1 }
 0x231   : > { %v950_v35 = vadd.f32 %v1336_v34, %v1192_v25  ;;  %v944_v36 = vpop.f32.mrb[5].mxu1 }
 0x232   : > { %v945_v37 = vadd.f32 %v1192_v25, %v944_v36 }
 0x233   : > { %1008 = vst [vmem:[%s1872_s26 + $0x28] sm:$0xff] %v950_v35 }
 0x234   : > { %1007 = vst [vmem:[%s1872_s26 + $0x20] sm:$0xff] %v945_v37 }
 0x238   : > { %v1339_v38 = vpop.f32.mrb[6].mxu1 }
 0x239   : > { %v960_v39 = vadd.f32 %v1339_v38, %v1192_v25  ;;  %v954_v40 = vpop.f32.mrb[7].mxu1 }
 0x23a   : > { %v955_v41 = vadd.f32 %v1192_v25, %v954_v40 }
 0x23b   : > { %1010 = vst [vmem:[%s1872_s26 + $0x38] sm:$0xff] %v960_v39 }
 0x23c   : > { %1009 = vst [vmem:[%s1872_s26 + $0x30] sm:$0xff] %v955_v41 }
 0x240   : > { %v1342_v42 = vpop.f32.mrb[8].mxu1 }
 0x241   : > { %v970_v43 = vadd.f32 %v1342_v42, %v1192_v25  ;;  %v964_v44 = vpop.f32.mrb[9].mxu1 }
 0x242   : > { %v965_v45 = vadd.f32 %v1192_v25, %v964_v44 }
 0x243   : > { %1012 = vst [vmem:[%s1872_s26 + $0x48] sm:$0xff] %v970_v43 }
 0x244   : > { %1011 = vst [vmem:[%s1872_s26 + $0x40] sm:$0xff] %v965_v45 }
 0x248   : > { %v1345_v46 = vpop.f32.mrb[10].mxu1 }
 0x249   : > { %v980_v47 = vadd.f32 %v1345_v46, %v1192_v25  ;;  %v974_v48 = vpop.f32.mrb[11].mxu1 }
 0x24a   : > { %v975_v49 = vadd.f32 %v1192_v25, %v974_v48 }
 0x24b   : > { %1014 = vst [vmem:[%s1872_s26 + $0x58] sm:$0xff] %v980_v47 }
 0x24c   : > { %1013 = vst [vmem:[%s1872_s26 + $0x50] sm:$0xff] %v975_v49 }
 0x250   : > { %v1348_v50 = vpop.f32.mrb[12].mxu1 }
 0x251   : > { %v990_v51 = vadd.f32 %v1348_v50, %v1192_v25  ;;  %v984_v52 = vpop.f32.mrb[13].mxu1 }
 0x252   : > { %v985_v53 = vadd.f32 %v1192_v25, %v984_v52 }
 0x253   : > { %1016 = vst [vmem:[%s1872_s26 + $0x68] sm:$0xff] %v990_v51 }
 0x254   : > { %1015 = vst [vmem:[%s1872_s26 + $0x60] sm:$0xff] %v985_v53 }
 0x258   : > { %v1351_v54 = vpop.f32.mrb[14].mxu1 }
 0x259   : > { %v1000_v55 = vadd.f32 %v1351_v54, %v1192_v25  ;;  %v994_v56 = vpop.f32.mrb[15].mxu1 }
 0x25a   : > { %v995_v57 = vadd.f32 %v1192_v25, %v994_v56 }
 0x25b   : > { %1018 = vst [vmem:[%s1872_s26 + $0x78] sm:$0xff] %v1000_v55 }
 0x25c   : > { %1017 = vst [vmem:[%s1872_s26 + $0x70] sm:$0xff] %v995_v57 }
 0x25d   : > { %1578 = shalt.err (!%p1575_p6)
}
 0x25e   : > { %s1579_s17 = scalar_lea.hbm %s1893_s7, 2048  ;;  %s1583_s27 = scalar_lea.hbm %s1952_s5, 4096 }
 0x25f   : > { %p1580_p7 = scmp.ne.s32.totalorder %s1893_s7, %s1579_s17  ;;  %p1584_p0 = scmp.lt.u32.totalorder %s1893_s7, %s1952_s5 }
 0x260   : > { %p1585_p1 = scmp.lt.u32.totalorder %s1583_s27, %s1579_s17  ;;  %p1587_p4 = scmp.lt.u32.totalorder %s1579_s17, %s1893_s7 }
 0x261   : > { %p1581_p9 = pnand %p1580_p7, %p1966_p8 }
 0x262   : > { %p1586_p13 = por %p1585_p1, %p1584_p0 }
 0x263   : > { %p1582_p12 = pneg %p1581_p9 }
 0x264   : > { %p1588_p10 = por %p1587_p4, %p1586_p13 }
 0x266   : > { %p1589_p11 = pnand %p1588_p10, %p1582_p12 }
 0x268   : > { %1592 = shalt.err (!%p1589_p11)
}
 0x269   : > { %s1661_s26 = smov 128   ;;  %s1662_s9 = smov 8  }
 0x26a   : > { %1392 = dma.vmem_to_hbm [thread:$0]  (%p1966_p8), %s1895_s12, 2048, %s1893_s7, %s1901_s8, %s1661_s26, %s1661_s26, %s1662_s9  }
 0x26b PF: > { %p1409_p2 = scmp.ge.s32.totalorder %s1651_s23, 2  ;;  %s1048_s14 = sand.u32 1, %s1631_s18  }
 0x26c   : > { %p1967_p3 = scmp.ne.s32.totalorder %s1960_s30, 0  ;;  %s1049_s11 = scalar_lea.sflag [#allocation5], %s1048_s14 }
 0x26e   : > { %p1402_p5 = pnand %p1409_p2, %p1967_p3 }
 0x270   : > { %1626 = dma.done.wait (!%p1402_p5), %s1049_s11, 2048  }
 0x271   : > { %1628 = vsyncadd (!%p1402_p5), %s1049_s11, 4294965248  ;;  %s20_s23 = sadd.s32 1, %s1651_s23   ;;  %s1968_s28 = sld [smem:[#allocation12_spill]] }
 0x272   : > { %p17_p6 = scmp.ge.s32.totalorder %s20_s23, 4   ;;  %s1969_s18 = smov %s1635_s19 }
 0x273   : > { %s1970_s19 = smov %s1639_s20  ;;  %s1971_s20 = smov %s1746_s6 }
 0x274   : > { %s1972_s21 = smov %s1647_s22  ;;  %19 = sbr.rel (!%p17_p6) target bundleno = 6 (0x6), region = 96 }
 0x277   : > { %s1973_s22 = smov %s1968_s28 }
 0x27b   :  { %1054 = vsyncpa [#allocation4], 1 }
 0x27c   :  { %1056 = vsyncpa [#allocation4 + $0x1], 1 }
 0x27d   :  { %1057 = vsyncpa [#allocation7], 1 }
 0x27e   :  { %1058 = vsyncpa [#allocation5], 1 }
 0x27f   :  { %1060 = vsyncpa [#allocation5 + $0x1], 1 }

</bundles_post_ra>
